<compile_context>
chip_gen: v5e
topology: v5e:2x2
jax: 0.10.0
libtpu: 0.0.40
codegen_flags: <defaults>
</compile_context>

<pallas_src>
import jax
import jax.numpy as jnp
from jax.experimental import pallas as pl
from jax.experimental.pallas import tpu as pltpu

HIDDEN = 128


def _round_up(x, m):
    return ((x + m - 1) // m) * m


def _cdiv(a, b):
    return -(-a // b)


def _mlp_kernel(x_ref, w1_ref, b1_ref, w2_ref, b2_ref, o_ref):
    # Layer 1: Linear(input_size -> 128) + ReLU.  MXU matmul with f32
    # accumulation; bias + ReLU on the VPU in f32.
    h = jnp.dot(x_ref[...], w1_ref[...], preferred_element_type=jnp.float32)
    h = jnp.maximum(h + b1_ref[...], 0.0)

    # Layer 2: Linear(128 -> actions_size), f32 accumulation.
    out = jnp.dot(h.astype(w2_ref.dtype), w2_ref[...],
                  preferred_element_type=jnp.float32)
    out = out + b2_ref[...]

    # Narrow (actions_size-wide) store: HBM writeback bytes dominate here, so
    # an unpadded masked store is strictly cheaper than a 128-lane-padded one.
    o_ref[...] = out.astype(o_ref.dtype)


def policy_gradient_forward(x, w1, b1, w2, b2, *, tb=2048, compute_dtype=None):
    """x: (B, input_size); returns logits (B, actions_size).

    compute_dtype: optional MXU operand dtype (e.g. jnp.bfloat16 on v6e/v7x).
    The cast happens in the wrapper so the DMA itself is narrower; f32
    accumulation / bias / ReLU are preserved.  Default (None) is a pure-f32
    path — recommended on v5e.  bf16 operands are a deliberate precision
    trade-off (fine for REINFORCE logits).
    """
    B, K = x.shape
    Kw, H = w1.shape
    assert Kw == K and H == HIDDEN
    A = w2.shape[1]
    out_dtype = x.dtype

    # Cast operands at rest (before the pallas_call) so DMA bytes shrink and
    # the VMEM-resident weights are already in MXU format.
    if compute_dtype is not None:
        x = x.astype(compute_dtype)
        w1 = w1.astype(compute_dtype)
        w2 = w2.astype(compute_dtype)
    b1 = b1.reshape(1, H).astype(jnp.float32)
    b2 = b2.reshape(1, A).astype(jnp.float32)

    # Batch tiling: >=2 grid steps for large batches (v7x megacore), tile a
    # multiple of 8 sublanes, minimal batch padding waste.
    n_steps = max(1, _cdiv(B, tb))
    if B > 64:
        n_steps = max(n_steps, 2)
    TB = _round_up(_cdiv(B, n_steps), 8)
    B_pad = _round_up(B, TB)

    x_p = jnp.pad(x, ((0, B_pad - B), (0, 0))) if B_pad > B else x
    grid = (B_pad // TB,)

    x_item = jnp.dtype(x.dtype).itemsize
    w_item = jnp.dtype(w1.dtype).itemsize
    o_item = jnp.dtype(out_dtype).itemsize
    flops = 2 * B_pad * (K * H + H * A)
    bytes_accessed = (
        B_pad * K * x_item
        + (K * H + H * A) * w_item
        + (H + A) * 4
        + B_pad * A * o_item
    )

    out = pl.pallas_call(
        _mlp_kernel,
        out_shape=jax.ShapeDtypeStruct((B_pad, A), out_dtype),
        grid_spec=pltpu.PrefetchScalarGridSpec(
            num_scalar_prefetch=0,
            grid=grid,
            in_specs=[
                # x: tiled over the batch grid axis -> pipelined HBM->VMEM DMA.
                # Last dim K equals the full array extent (no 128 padding).
                pl.BlockSpec((TB, K), lambda i: (i, 0)),
                # Weights / biases: constant block index -> VMEM-resident.
                pl.BlockSpec((K, H), lambda i: (0, 0)),
                pl.BlockSpec((1, H), lambda i: (0, 0)),
                pl.BlockSpec((H, A), lambda i: (0, 0)),
                pl.BlockSpec((1, A), lambda i: (0, 0)),
            ],
            out_specs=pl.BlockSpec((TB, A), lambda i: (i, 0)),
        ),
        compiler_params=pltpu.CompilerParams(
            dimension_semantics=("parallel",),  # batch axis -> both TCs on v7x
        ),
        cost_estimate=pl.CostEstimate(
            flops=flops, transcendentals=0, bytes_accessed=bytes_accessed
        ),
    )(x_p, w1, b1, w2, b2)

    # Strip only the batch padding (no lane padding to remove).
    return out[:B] if B_pad > B else out
    # TODO(synk): downstream policy math (softmax / Categorical sampling) lives
    # outside PolicyGradientNetwork.forward in the reference, so it is not fused.


def init_params(key, input_size, actions_size, dtype=jnp.float32):
    """Deterministic synthetic init (uniform ~ torch Linear default bounds)."""
    k1, k2, k3, k4 = jax.random.split(key, 4)
    bound1 = 1.0 / (input_size ** 0.5)
    bound2 = 1.0 / (HIDDEN ** 0.5)
    w1 = jax.random.uniform(k1, (input_size, HIDDEN), dtype, -bound1, bound1)
    b1 = jax.random.uniform(k2, (1, HIDDEN), dtype, -bound1, bound1)
    w2 = jax.random.uniform(k3, (HIDDEN, actions_size), dtype, -bound2, bound2)
    b2 = jax.random.uniform(k4, (1, actions_size), dtype, -bound2, bound2)
    return w1, b1, w2, b2


def _reference(x, w1, b1, w2, b2):
    return jnp.maximum(x @ w1 + b1.reshape(1, -1), 0.0) @ w2 + b2.reshape(1, -1)


if __name__ == "__main__":
    input_size = 16
    actions_size = 4

    key = jax.random.PRNGKey(0)
    kx, kp, kx2 = jax.random.split(key, 3)
    w1, b1, w2, b2 = init_params(kp, input_size, actions_size)

    # --- Small case (module-scale shapes): single grid step, f32 path. ---
    batch = 8
    x = jax.random.normal(kx, (batch, input_size), jnp.float32)
    logits = policy_gradient_forward(x, w1, b1, w2, b2)
    jax.block_until_ready(logits)
    ref = _reference(x, w1, b1, w2, b2)
    assert logits.shape == (batch, actions_size)
    assert jnp.allclose(logits, ref, atol=1e-5, rtol=1e-5)

    # --- Larger, non-multiple batch: >=2 pipelined grid steps (megacore). ---
    batch2 = 1000
    x2 = jax.random.normal(kx2, (batch2, input_size), jnp.float32)
    logits2 = policy_gradient_forward(x2, w1, b1, w2, b2)
    jax.block_until_ready(logits2)
    ref2 = _reference(x2, w1, b1, w2, b2)
    assert logits2.shape == (batch2, actions_size)
    assert jnp.allclose(logits2, ref2, atol=1e-4, rtol=1e-4)

    # --- bf16-at-rest operand path (v6e/v7x); f32 accumulation preserved. ---
    logits_bf16 = policy_gradient_forward(
        x2, w1, b1, w2, b2, compute_dtype=jnp.bfloat16
    )
    jax.block_until_ready(logits_bf16)
    assert logits_bf16.shape == (batch2, actions_size)
    assert jnp.allclose(logits_bf16, ref2, atol=2e-1, rtol=2e-1)

    print("KERNEL_OK")
</pallas_src>

<mosaic_0001>
module attributes {stable_mosaic.version = 11 : i64} {
  func.func @_mlp_kernel(%arg0: i32, %arg1: memref<8x16xf32, #tpu.memory_space<vmem>>, %arg2: memref<16x128xf32, #tpu.memory_space<vmem>>, %arg3: memref<1x128xf32, #tpu.memory_space<vmem>>, %arg4: memref<128x4xf32, #tpu.memory_space<vmem>>, %arg5: memref<1x4xf32, #tpu.memory_space<vmem>>, %arg6: memref<8x4xf32, #tpu.memory_space<vmem>>) attributes {dimension_semantics = [#tpu.dimension_semantics<parallel>], iteration_bounds = array<i64: 1>, scalar_prefetch = 0 : i64, scratch_operands = 0 : i64, tpu.core_type = #tpu.core_type<tc>, window_params = [{transform_indices = @transform_0, window_bounds = array<i64: 8, 16>}, {pipeline_mode = #tpu.pipeline_mode<synchronous>, transform_indices = @transform_1, window_bounds = array<i64: 16, 128>}, {pipeline_mode = #tpu.pipeline_mode<synchronous>, transform_indices = @transform_2, window_bounds = array<i64: 1, 128>}, {pipeline_mode = #tpu.pipeline_mode<synchronous>, transform_indices = @transform_3, window_bounds = array<i64: 128, 4>}, {pipeline_mode = #tpu.pipeline_mode<synchronous>, transform_indices = @transform_4, window_bounds = array<i64: 1, 4>}, {transform_indices = @transform_5, window_bounds = array<i64: 8, 4>}]} {
    %c0 = arith.constant 0 : index
    %c0_0 = arith.constant 0 : index
    %0 = vector.load %arg1[%c0, %c0_0] : memref<8x16xf32, #tpu.memory_space<vmem>>, vector<8x16xf32>
    %c0_1 = arith.constant 0 : index
    %c0_2 = arith.constant 0 : index
    %1 = vector.load %arg2[%c0_1, %c0_2] : memref<16x128xf32, #tpu.memory_space<vmem>>, vector<16x128xf32>
    %cst = arith.constant dense<0.000000e+00> : vector<8x128xf32>
    %2 = tpu.matmul %0, %1, %cst {dimension_numbers = #tpu.dot_dimension_numbers<[1], [0], [0], [1], [0, 0, 1, 1], [], []>} : vector<8x16xf32>, vector<16x128xf32>, vector<8x128xf32> -> vector<8x128xf32>
    %c0_3 = arith.constant 0 : index
    %c0_4 = arith.constant 0 : index
    %3 = vector.load %arg3[%c0_3, %c0_4] : memref<1x128xf32, #tpu.memory_space<vmem>>, vector<1x128xf32>
    %4 = vector.broadcast %3 : vector<1x128xf32> to vector<8x128xf32>
    %5 = arith.addf %2, %4 : vector<8x128xf32>
    %cst_5 = arith.constant 0.000000e+00 : f32
    %6 = vector.broadcast %cst_5 : f32 to vector<8x128xf32>
    %7 = arith.maximumf %5, %6 : vector<8x128xf32>
    %c0_6 = arith.constant 0 : index
    %c0_7 = arith.constant 0 : index
    %8 = vector.load %arg4[%c0_6, %c0_7] : memref<128x4xf32, #tpu.memory_space<vmem>>, vector<128x4xf32>
    %cst_8 = arith.constant dense<0.000000e+00> : vector<8x4xf32>
    %9 = tpu.matmul %7, %8, %cst_8 {dimension_numbers = #tpu.dot_dimension_numbers<[1], [0], [0], [1], [0, 0, 1, 1], [], []>} : vector<8x128xf32>, vector<128x4xf32>, vector<8x4xf32> -> vector<8x4xf32>
    %c0_9 = arith.constant 0 : index
    %c0_10 = arith.constant 0 : index
    %10 = vector.load %arg5[%c0_9, %c0_10] : memref<1x4xf32, #tpu.memory_space<vmem>>, vector<1x4xf32>
    %11 = vector.broadcast %10 : vector<1x4xf32> to vector<8x4xf32>
    %12 = arith.addf %9, %11 : vector<8x4xf32>
    %c0_11 = arith.constant 0 : index
    %c0_12 = arith.constant 0 : index
    %13 = vector.load %arg6[%c0_11, %c0_12] : memref<8x4xf32, #tpu.memory_space<vmem>>, vector<8x4xf32>
    tpu.vector_store %arg6[%c0_11, %c0_12], %12 {strides = array<i32>} : memref<8x4xf32, #tpu.memory_space<vmem>>, vector<8x4xf32>,
    return
  }
  func.func @transform_0(%arg0: i32) -> (i32, i32) {
    %c0_i32 = arith.constant 0 : i32
    %c0_i32_0 = arith.constant 0 : i32
    return %arg0, %c0_i32 : i32, i32
  }
  func.func @transform_1(%arg0: i32) -> (i32, i32) {
    %c0_i32 = arith.constant 0 : i32
    %c0_i32_0 = arith.constant 0 : i32
    %c0_i32_1 = arith.constant 0 : i32
    return %c0_i32, %c0_i32_0 : i32, i32
  }
  func.func @transform_2(%arg0: i32) -> (i32, i32) {
    %c0_i32 = arith.constant 0 : i32
    %c0_i32_0 = arith.constant 0 : i32
    %c0_i32_1 = arith.constant 0 : i32
    return %c0_i32, %c0_i32_0 : i32, i32
  }
  func.func @transform_3(%arg0: i32) -> (i32, i32) {
    %c0_i32 = arith.constant 0 : i32
    %c0_i32_0 = arith.constant 0 : i32
    %c0_i32_1 = arith.constant 0 : i32
    return %c0_i32, %c0_i32_0 : i32, i32
  }
  func.func @transform_4(%arg0: i32) -> (i32, i32) {
    %c0_i32 = arith.constant 0 : i32
    %c0_i32_0 = arith.constant 0 : i32
    %c0_i32_1 = arith.constant 0 : i32
    return %c0_i32, %c0_i32_0 : i32, i32
  }
  func.func @transform_5(%arg0: i32) -> (i32, i32) {
    %c0_i32 = arith.constant 0 : i32
    %c0_i32_0 = arith.constant 0 : i32
    return %arg0, %c0_i32 : i32, i32
  }
}

</mosaic_0001>

<bundles_post_ra>
// kernel: tpu_custom_call.1
= control target key start
LH: loop header
LB: loop body
LE: loop exit
PB: predicated region body
PF: predicated region fallthrough
CT: control target
= control target key end

     0   :  { %vm27_vm0 = vcmask 130048   ;;  %vm92_vm1 = vcmask 31744   ;;  %s197_s1 = inlined_call_operand.vmem [shape: f32[16,128], index: 1, kind: input, shape index: {}]   ;;  %s198_s0 = inlined_call_operand.vmem [shape: f32[8,16], index: 0, kind: input, shape index: {}]   ;;  %s199_s3 = inlined_call_operand.vmem [shape: f32[128,4], index: 3, kind: input, shape index: {}]   ;;  %s200_s2 = inlined_call_operand.vmem [shape: f32[1,128], index: 2, kind: input, shape index: {}]   ;;  %s201_s4 = inlined_call_operand.vmem [shape: f32[1,4], index: 4, kind: input, shape index: {}]   ;;  %s202_s5 = inlined_call_operand.vmem [shape: f32[8,4], index: 5, kind: output, shape index: {}]  }
   0x1   :  { %v22_v0 = vld [vmem:[%s197_s1 + $0x8] sm:$0xff]  ;;  %v21_v1 = vld [vmem:[%s197_s1] sm:$0xff]  ;;  %v67_v3 = vld [vmem:[%s199_s3 + $0x78] sm:$0xff] }
   0x2   :  { %45 = vmatpush.msra.mxu0 %v22_v0  ;;  %v20_v2 = vld [vmem:[%s198_s0] sm:$0xff]  ;;  %v66_v4 = vld [vmem:[%s199_s3 + $0x70] sm:$0xff]  ;;  %72 = vmatpush.msra.mxu1 %v67_v3  ;;  %v65_v5 = vld [vmem:[%s199_s3 + $0x68] sm:$0xff] }
   0x3   :  { %v64_v6 = vld [vmem:[%s199_s3 + $0x60] sm:$0xff]  ;;  %v63_v7 = vld [vmem:[%s199_s3 + $0x58] sm:$0xff]  ;;  %v62_v8 = vld [vmem:[%s199_s3 + $0x50] sm:$0xff] }
   0x4   :  { %46 = vmatpush.msra.mxu0 %v21_v1  ;;  %73 = vmatpush.msra.mxu1 %v66_v4  ;;  %v61_v9 = vld [vmem:[%s199_s3 + $0x48] sm:$0xff]  ;;  %v60_v10 = vld [vmem:[%s199_s3 + $0x40] sm:$0xff]  ;;  %v59_v11 = vld [vmem:[%s199_s3 + $0x38] sm:$0xff] }
   0x5   :  { %98 = vmatmul.msk.f32.vlgmr.msra.gmra.mxu0 %vm27_vm0, %v20_v2  ;;  %v58_v12 = vld [vmem:[%s199_s3 + $0x30] sm:$0xff]  ;;  %v57_v13 = vld [vmem:[%s199_s3 + $0x28] sm:$0xff]  ;;  %v56_v14 = vld [vmem:[%s199_s3 + $0x20] sm:$0xff] }
   0x6   :  { %74 = vmatpush.msra.mxu1 %v65_v5  ;;  %v55_v15 = vld [vmem:[%s199_s3 + $0x18] sm:$0xff]  ;;  %v54_v16 = vld [vmem:[%s199_s3 + $0x10] sm:$0xff]  ;;  %v53_v17 = vld [vmem:[%s199_s3 + $0x8] sm:$0xff] }
   0x7   :  { %v52_v18 = vld [vmem:[%s199_s3] sm:$0xff] }
   0x8   :  { %75 = vmatpush.msra.mxu1 %v64_v6  ;;  %v99_v19 = vld [vmem:[%s200_s2] ss:$0 sm:$0xff] }
   0x9   :  { %v100_v23 = vld [vmem:[%s201_s4] ss:$0 sm:$0xff] }
   0xa   :  { %76 = vmatpush.msra.mxu1 %v63_v7 }
   0xc   :  { %77 = vmatpush.msra.mxu1 %v62_v8 }
   0xe   :  { %78 = vmatpush.msra.mxu1 %v61_v9 }
  0x10   :  { %79 = vmatpush.msra.mxu1 %v60_v10 }
  0x12   :  { %80 = vmatpush.msra.mxu1 %v59_v11 }
  0x14   :  { %81 = vmatpush.msra.mxu1 %v58_v12 }
  0x16   :  { %82 = vmatpush.msra.mxu1 %v57_v13 }
  0x18   :  { %83 = vmatpush.msra.mxu1 %v56_v14 }
  0x1a   :  { %84 = vmatpush.msra.mxu1 %v55_v15 }
  0x1c   :  { %85 = vmatpush.msra.mxu1 %v54_v16 }
  0x1e   :  { %86 = vmatpush.msra.mxu1 %v53_v17 }
  0x20   :  { %87 = vmatpush.msra.mxu1 %v52_v18 }
  0x82   :  { %v48_v20 = vpop.f32.mrf.mxu0 }
  0x83   :  { %v49_v21 = vadd.f32 %v99_v19, %v48_v20 }
  0x85   :  { %v51_v22 = vmax.f32 %v49_v21, 0.0 }
  0x87   :  { %88 = vmatmul.f32.vlgmr.msra.gmra.mxu1 %v51_v22 }
 0x104   :  { %v89_v24 = vpop.f32.mrf.mxu1 }
 0x105   :  { %v90_v25 = vadd.f32 %v100_v23, %v89_v24 }
 0x107   :  { %93 = vst.msk [vmem:[%s202_s5] sm:$0xff] %vm92_vm1, %v90_v25 }

</bundles_post_ra>
